<compile_context>
chip_gen: v5e
topology: v5e:2x2
jax: 0.10.0
libtpu: 0.0.40
codegen_flags: <defaults>
</compile_context>

<pallas_src>
import jax
import jax.numpy as jnp
from jax import lax
from jax.experimental import pallas as pl
from jax.experimental.pallas import tpu as pltpu


_VMEM_LIMIT_BYTES = 32 * 1024 * 1024          # safe scoped limit on v5e/v6e/v7x
_VMEM_BLOCK_BUDGET = 20 * 1024 * 1024         # double-buffered block budget


def _qkT_group_kernel(a_ref, b_ref, o_ref):
    # a_ref: (G, S, D), b_ref: (G, T, D), o_ref: (G, S, T)
    # out[g, s, t] = sum_d a[g, s, d] * b[g, t, d]   (== a @ b^T per head)
    o_ref[...] = lax.dot_general(
        a_ref[...], b_ref[...],
        dimension_numbers=(((2,), (2,)), ((0,), (0,))),
        preferred_element_type=jnp.float32,
    ).astype(o_ref.dtype)


def _qkT_tile_kernel(a_ref, b_ref, o_ref):
    # a_ref: (tq, D), b_ref: (tk, D), o_ref: (tq, tk)
    o_ref[...] = lax.dot_general(
        a_ref[...], b_ref[...],
        dimension_numbers=(((1,), (1,)), ((), ())),
        preferred_element_type=jnp.float32,
    ).astype(o_ref.dtype)


def _pick_group(bh, s, d, itemsize, budget):
    """Largest divisor G of BH whose double-buffered blocks fit `budget`,
    keeping grid length >= 2 so both TensorCores (v7x megacore) get work."""
    best = 1
    for g in range(1, bh + 1):
        if bh % g:
            continue
        if bh >= 2 and (bh // g) < 2:
            continue                      # avoid grid=1 (one TC idle on v7x)
        step_bytes = 2 * (2 * g * s * d + g * s * s) * itemsize
        if step_bytes <= budget:
            best = g
    return best


def _pick_tile(s, d, itemsize, budget):
    """Output tile edge (multiple of 128) whose double-buffered blocks fit."""
    for t in (1024, 512, 256, 128):
        if s % t:
            continue
        if 2 * (2 * t * d + t * t) * itemsize <= budget:
            return t
    return None


def transpose_matmul(x497, x508):
    """matmul(x508, x497.transpose(-1, -2)) as a Pallas TPU kernel."""
    assert x497.shape == x508.shape
    B, H, S, D = x497.shape
    BH = B * H
    itemsize = jnp.dtype(x508.dtype).itemsize

    a = x508.reshape(BH, S, D)   # left operand
    b = x497.reshape(BH, S, D)   # right operand (contracted over D, no transpose)

    cost = pl.CostEstimate(
        flops=2 * BH * S * S * D,
        transcendentals=0,
        bytes_accessed=itemsize * BH * (2 * S * D + S * S),
    )

    whole_s_bytes = 2 * (2 * S * D + S * S) * itemsize   # G=1, double-buffered
    if whole_s_bytes <= _VMEM_BLOCK_BUDGET:
        # ---- Path A: whole-S output slab, G heads per grid step ----
        G = _pick_group(BH, S, D, itemsize, _VMEM_BLOCK_BUDGET)
        out = pl.pallas_call(
            _qkT_group_kernel,
            out_shape=jax.ShapeDtypeStruct((BH, S, S), x508.dtype),
            grid=(BH // G,),
            in_specs=[
                pl.BlockSpec((G, S, D), lambda g: (g, 0, 0)),
                pl.BlockSpec((G, S, D), lambda g: (g, 0, 0)),
            ],
            out_specs=pl.BlockSpec((G, S, S), lambda g: (g, 0, 0)),
            compiler_params=pltpu.CompilerParams(
                dimension_semantics=("parallel",),
                vmem_limit_bytes=_VMEM_LIMIT_BYTES,
            ),
            cost_estimate=cost,
        )(a, b)
        return out.reshape(B, H, S, S)

    # ---- Path B: S is large -> tile the (S, S) output so double-buffering
    # survives within v7x's smaller VMEM.  D (=head_dim) stays whole. ----
    t = _pick_tile(S, D, itemsize, _VMEM_BLOCK_BUDGET)
    if t is None:
        # S not a multiple of 128: fall back to whole-S, one head per step.
        t = None
    if t is not None:
        out = pl.pallas_call(
            _qkT_tile_kernel,
            out_shape=jax.ShapeDtypeStruct((BH, S, S), x508.dtype),
            grid=(BH, S // t, S // t),
            in_specs=[
                pl.BlockSpec((None, t, D), lambda bh, i, j: (bh, i, 0)),
                pl.BlockSpec((None, t, D), lambda bh, i, j: (bh, j, 0)),
            ],
            out_specs=pl.BlockSpec((None, t, t), lambda bh, i, j: (bh, i, j)),
            compiler_params=pltpu.CompilerParams(
                dimension_semantics=("parallel", "parallel", "parallel"),
                vmem_limit_bytes=_VMEM_LIMIT_BYTES,
            ),
            cost_estimate=cost,
        )(a, b)
        return out.reshape(B, H, S, S)

    # Last-resort fallback: one head per step, whole-S block.
    out = pl.pallas_call(
        _qkT_group_kernel,
        out_shape=jax.ShapeDtypeStruct((BH, S, S), x508.dtype),
        grid=(BH,),
        in_specs=[
            pl.BlockSpec((1, S, D), lambda g: (g, 0, 0)),
            pl.BlockSpec((1, S, D), lambda g: (g, 0, 0)),
        ],
        out_specs=pl.BlockSpec((1, S, S), lambda g: (g, 0, 0)),
        compiler_params=pltpu.CompilerParams(
            dimension_semantics=("parallel",),
            vmem_limit_bytes=2 * _VMEM_LIMIT_BYTES,
        ),
        cost_estimate=cost,
    )(a, b)
    return out.reshape(B, H, S, S)


if __name__ == "__main__":
    # Small shapes consistent with the module: (B, H, S, D) = (1, 4, 128, 64)
    # (original module used (1, 12, 384, 64)).  BH=4 -> G=2, grid=2, so the
    # grouped-heads path is exercised and both TCs get work on v7x.
    key = jax.random.PRNGKey(0)
    k1, k2 = jax.random.split(key)
    B, H, S, D = 1, 4, 128, 64
    x497 = jax.random.normal(k1, (B, H, S, D), dtype=jnp.float32)
    x508 = jax.random.normal(k2, (B, H, S, D), dtype=jnp.float32)

    out = transpose_matmul(x497, x508)
    out = jax.block_until_ready(out)

    # Reference: matmul(x508, x497.transpose(-1, -2))
    ref = jnp.matmul(x508, jnp.swapaxes(x497, -1, -2))
    assert out.shape == (B, H, S, S)
    assert jnp.allclose(out, ref, atol=1e-4, rtol=1e-4)

    print("KERNEL_OK")
</pallas_src>

<mosaic_0001>
module attributes {stable_mosaic.version = 11 : i64} {
  func.func @_qkT_group_kernel(%arg0: i32, %arg1: memref<2x128x64xf32, #tpu.memory_space<vmem>>, %arg2: memref<2x128x64xf32, #tpu.memory_space<vmem>>, %arg3: memref<2x128x128xf32, #tpu.memory_space<vmem>>) attributes {dimension_semantics = [#tpu.dimension_semantics<parallel>], iteration_bounds = array<i64: 2>, scalar_prefetch = 0 : i64, scratch_operands = 0 : i64, tpu.core_type = #tpu.core_type<tc>, window_params = [{transform_indices = @transform_0, window_bounds = array<i64: 2, 128, 64>}, {transform_indices = @transform_1, window_bounds = array<i64: 2, 128, 64>}, {transform_indices = @transform_2, window_bounds = array<i64: 2, 128, 128>}]} {
    %c0 = arith.constant 0 : index
    %c0_0 = arith.constant 0 : index
    %c0_1 = arith.constant 0 : index
    %0 = vector.load %arg1[%c0, %c0_0, %c0_1] : memref<2x128x64xf32, #tpu.memory_space<vmem>>, vector<2x128x64xf32>
    %c0_2 = arith.constant 0 : index
    %c0_3 = arith.constant 0 : index
    %c0_4 = arith.constant 0 : index
    %1 = vector.load %arg2[%c0_2, %c0_3, %c0_4] : memref<2x128x64xf32, #tpu.memory_space<vmem>>, vector<2x128x64xf32>
    %cst = arith.constant dense<0.000000e+00> : vector<2x128x128xf32>
    %2 = tpu.matmul %0, %1, %cst {dimension_numbers = #tpu.dot_dimension_numbers<[2], [2], [1], [1], [0, 0, 0, 1, 1, 1], [0], [0]>} : vector<2x128x64xf32>, vector<2x128x64xf32>, vector<2x128x128xf32> -> vector<2x128x128xf32>
    %c0_5 = arith.constant 0 : index
    %c0_6 = arith.constant 0 : index
    %c0_7 = arith.constant 0 : index
    %3 = vector.load %arg3[%c0_5, %c0_6, %c0_7] : memref<2x128x128xf32, #tpu.memory_space<vmem>>, vector<2x128x128xf32>
    tpu.vector_store %arg3[%c0_5, %c0_6, %c0_7], %2 {strides = array<i32>} : memref<2x128x128xf32, #tpu.memory_space<vmem>>, vector<2x128x128xf32>,
    return
  }
  func.func @transform_0(%arg0: i32) -> (i32, i32, i32) {
    %c0_i32 = arith.constant 0 : i32
    %c0_i32_0 = arith.constant 0 : i32
    %c0_i32_1 = arith.constant 0 : i32
    return %arg0, %c0_i32, %c0_i32_0 : i32, i32, i32
  }
  func.func @transform_1(%arg0: i32) -> (i32, i32, i32) {
    %c0_i32 = arith.constant 0 : i32
    %c0_i32_0 = arith.constant 0 : i32
    %c0_i32_1 = arith.constant 0 : i32
    return %arg0, %c0_i32, %c0_i32_0 : i32, i32, i32
  }
  func.func @transform_2(%arg0: i32) -> (i32, i32, i32) {
    %c0_i32 = arith.constant 0 : i32
    %c0_i32_0 = arith.constant 0 : i32
    %c0_i32_1 = arith.constant 0 : i32
    return %arg0, %c0_i32, %c0_i32_0 : i32, i32, i32
  }
}

</mosaic_0001>

<bundles_post_ra>
// kernel: tpu_custom_call.1
= control target key start
LH: loop header
LB: loop body
LE: loop exit
PB: predicated region body
PF: predicated region fallthrough
CT: control target
= control target key end

     0   :  { %7 = vsyncpa [#allocation3], 0  ;;  %s1219_s0 = inlined_call_operand.vmem [shape: f32[4,128,64], index: 0, kind: input, shape index: {}]   ;;  %s1220_s1 = inlined_call_operand.vmem [shape: f32[4,128,64], index: 1, kind: input, shape index: {}]   ;;  %s1221_s2 = inlined_call_operand.hbm [shape: f32[4,128,128], index: 2, kind: output, shape index: {}]  }
   0x1   :  { %9 = vsyncpa [#allocation3 + $0x1], 0  ;;  %s922_s9 = smov 0   ;;  %s924_s10 = smov 0  }
   0x2   :  { %s926_s11 = smov 0   ;;  %s928_s12 = smov 0  }
   0x3 LB: > { %s943_s13 = sadd.s32 4294967295, %s903_s12   ;;  %s683_s14 = sadd.s32 4294967294, %s903_s12   ;;  %s903_s12 = sphi %s928_s12, %s1227_s12   ;;  %s899_s11 = sphi %s926_s11, %s1226_s11   ;;  %s895_s10 = sphi %s924_s10, %s1225_s10   ;;  %s891_s9 = sphi %s922_s9, %s1224_s9  }
   0x4   : > { %s947_s15 = sadd.s32 1, %s903_s12   ;;  %s74_s16 = sadd.s32 1, %s899_s11 }
   0x5   : > { %s71_s17 = ssub.s32 %s903_s12, %s947_s15  ;;  %p84_p0 = scmp.ne.s32.totalorder %s899_s11, %s895_s10 }
   0x6   : > { %p72_p1 = scmp.eq.s32.totalorder %s71_s17, 0  ;;  %p85_p2 = scmp.eq.s32.totalorder %s943_s13, 1 }
   0x7   : > { %p90_p3 = scmp.ne.s32.totalorder %s895_s10, %s891_s9  ;;  %p91_p4 = scmp.eq.s32.totalorder %s683_s14, 1 }
   0x8   : > { %s958_s18 = scalar_select %p72_p1, %s899_s11, %s74_s16  }
   0x9   : > { %p960_p5 = por %p85_p2, %p84_p0  ;;  %p964_p6 = por %p91_p4, %p90_p3 }
   0xa   : > { %p686_p7 = scmp.ge.s32.totalorder %s903_s12, 1  ;;  %p129_p8 = scmp.lt.s32.totalorder %s903_s12, 3 }
   0xc   : > { %p130_p9 = pnand %p686_p7, %p129_p8 }
   0xd   : > { %s688_s21 = sshll.u32 (!%p130_p9), %s943_s13, 1  ;;  %s155_s29 = sand.u32 (!%p130_p9), 1, %s895_s10  }
   0xe   : > { %133 = sbr.rel (%p130_p9) target bundleno = 279 (0x117), region = 28  ;;  %p159_p10 = scmp.lt.s32.totalorder (!%p130_p9), %s688_s21, 3 }
   0xf   : > { %s687_s30 = sshll.u32 (!%p130_p9), %s155_s29, 8  ;;  %s767_s4 = sshll.u32 (!%p130_p9), %s943_s13, 8 }
  0x10   : > { %s1151_s3 = scalar_lea.vmem (!%p130_p9), [#allocation2], %s687_s30  ;;  %s605_s7 = scalar_lea.hbm (!%p130_p9), %s1221_s2, %s767_s4 }
  0x11   : > { %s606_s8 = sshll.u32 (!%p130_p9), %s1151_s3, 4  ;;  %s608_s14 = sshll.u32 (!%p130_p9), %s605_s7, 4  ;;  %s607_s8 = int_to_ptr.vmem [resolvable:$true] %s606_s8  ;;  %s609_s14 = int_to_ptr.hbm [resolvable:$true] %s608_s14 }
  0x12   : > { %s593_s13 = scalar_lea.sflag (!%p130_p9), [#allocation3], %s155_s29  ;;  %s855_s16 = sshra.s32 (!%p130_p9), %s609_s14, 4  ;;  %s856_s16 = int_to_ptr.hbm [resolvable:$true] %s855_s16 }
  0x13   : > { %s1229_s21 = smov (!%p159_p10, %s688_s21), 3  ;;  %vm237_vm0 = vcmask 523264   ;;  %s857_s17 = scalar_lea.hbm %s856_s16, 256 }
  0x14   : > { %s764_s22 = sshll.u32 %s1229_s21, 7  ;;  %p858_p11 = scmp.ne.s32.totalorder %s856_s16, %s857_s17 }
  0x15   : > { %s979_s25 = scalar_lea.vmem %s1220_s1, %s764_s22  ;;  %s1078_s28 = scalar_lea.vmem %s1219_s0, %s764_s22 }
  0x16   : > { %v220_v0 = vld [vmem:[%s979_s25 + $0x78] sm:$0xff]  ;;  %v219_v2 = vld [vmem:[%s979_s25 + $0x70] sm:$0xff]  ;;  %v218_v4 = vld [vmem:[%s979_s25 + $0x68] sm:$0xff]  ;;  %p859_p12 = pnand %p858_p11, %p960_p5  ;;  %s861_s23 = scalar_lea.hbm %s1221_s2, 512 }
  0x17   : > { %v236_v1 = vld [vmem:[%s979_s25 + $0xf8] sm:$0xff]  ;;  %768 = vmatpush.xpose.msk.msra.mxu2 %vm237_vm0, %v220_v0  ;;  %v235_v3 = vld [vmem:[%s979_s25 + $0xf0] sm:$0xff]  ;;  %694 = vmatpush.xpose.msk.msra.mxu0 %vm237_vm0, %v220_v0  ;;  %v234_v5 = vld [vmem:[%s979_s25 + $0xe8] sm:$0xff]  ;;  %p862_p0 = scmp.lt.s32.totalorder %s856_s16, %s1221_s2  ;;  %p863_p1 = scmp.lt.s32.totalorder %s861_s23, %s857_s17 }
  0x18   : > { %784 = vmatpush.xpose.msk.msra.mxu3 %vm237_vm0, %v236_v1  ;;  %726 = vmatpush.xpose.msk.msra.mxu1 %vm237_vm0, %v236_v1  ;;  %v217_v6 = vld [vmem:[%s979_s25 + $0x60] sm:$0xff]  ;;  %v216_v8 = vld [vmem:[%s979_s25 + $0x58] sm:$0xff]  ;;  %v215_v10 = vld [vmem:[%s979_s25 + $0x50] sm:$0xff]  ;;  %p860_p13 = pneg %p859_p12 }
  0x19   : > { %v233_v7 = vld [vmem:[%s979_s25 + $0xe0] sm:$0xff]  ;;  %v232_v9 = vld [vmem:[%s979_s25 + $0xd8] sm:$0xff]  ;;  %v231_v11 = vld [vmem:[%s979_s25 + $0xd0] sm:$0xff]  ;;  %p864_p2 = por %p863_p1, %p862_p0 }
  0x1a   : > { %v214_v12 = vld [vmem:[%s979_s25 + $0x48] sm:$0xff]  ;;  %v213_v14 = vld [vmem:[%s979_s25 + $0x40] sm:$0xff]  ;;  %v212_v16 = vld [vmem:[%s979_s25 + $0x38] sm:$0xff] }
  0x1b   : > { %769 = vmatpush.xpose.msk.msra.mxu2 %vm237_vm0, %v219_v2  ;;  %695 = vmatpush.xpose.msk.msra.mxu0 %vm237_vm0, %v219_v2  ;;  %v230_v13 = vld [vmem:[%s979_s25 + $0xc8] sm:$0xff]  ;;  %v229_v15 = vld [vmem:[%s979_s25 + $0xc0] sm:$0xff]  ;;  %v228_v17 = vld [vmem:[%s979_s25 + $0xb8] sm:$0xff]  ;;  %p865_p3 = pnand %p864_p2, %p860_p13 }
  0x1c   : > { %785 = vmatpush.xpose.msk.msra.mxu3 %vm237_vm0, %v235_v3  ;;  %727 = vmatpush.xpose.msk.msra.mxu1 %vm237_vm0, %v235_v3  ;;  %v211_v18 = vld [vmem:[%s979_s25 + $0x30] sm:$0xff]  ;;  %v210_v20 = vld [vmem:[%s979_s25 + $0x28] sm:$0xff]  ;;  %v209_v22 = vld [vmem:[%s979_s25 + $0x20] sm:$0xff] }
  0x1d   : > { %v227_v19 = vld [vmem:[%s979_s25 + $0xb0] sm:$0xff]  ;;  %v226_v21 = vld [vmem:[%s979_s25 + $0xa8] sm:$0xff]  ;;  %v225_v23 = vld [vmem:[%s979_s25 + $0xa0] sm:$0xff] }
  0x1e   : > { %v208_v24 = vld [vmem:[%s979_s25 + $0x18] sm:$0xff]  ;;  %v207_v26 = vld [vmem:[%s979_s25 + $0x10] sm:$0xff]  ;;  %v206_v28 = vld [vmem:[%s979_s25 + $0x8] sm:$0xff] }
  0x1f   : > { %770 = vmatpush.xpose.msk.msra.mxu2 %vm237_vm0, %v218_v4  ;;  %696 = vmatpush.xpose.msk.msra.mxu0 %vm237_vm0, %v218_v4  ;;  %v224_v25 = vld [vmem:[%s979_s25 + $0x98] sm:$0xff]  ;;  %v223_v27 = vld [vmem:[%s979_s25 + $0x90] sm:$0xff]  ;;  %v222_v29 = vld [vmem:[%s979_s25 + $0x88] sm:$0xff] }
  0x20   : > { %786 = vmatpush.xpose.msk.msra.mxu3 %vm237_vm0, %v234_v5  ;;  %728 = vmatpush.xpose.msk.msra.mxu1 %vm237_vm0, %v234_v5  ;;  %v205_v30 = vld [vmem:[%s979_s25] sm:$0xff]  ;;  %v182_v36 = vld [vmem:[%s1078_s28 + $0x48] sm:$0xff]  ;;  %v183_v40 = vld [vmem:[%s1078_s28 + $0x50] sm:$0xff] }
  0x21   : > { %v221_v31 = vld [vmem:[%s979_s25 + $0x80] sm:$0xff]  ;;  %v198_v37 = vld [vmem:[%s1078_s28 + $0xc8] sm:$0xff]  ;;  %v199_v41 = vld [vmem:[%s1078_s28 + $0xd0] sm:$0xff] }
  0x22   : > { %v181_v32 = vld [vmem:[%s1078_s28 + $0x40] sm:$0xff]  ;;  %v174_v38 = vld [vmem:[%s1078_s28 + $0x8] sm:$0xff]  ;;  %v175_v42 = vld [vmem:[%s1078_s28 + $0x10] sm:$0xff] }
  0x23   : > { %771 = vmatpush.xpose.msk.msra.mxu2 %vm237_vm0, %v217_v6  ;;  %697 = vmatpush.xpose.msk.msra.mxu0 %vm237_vm0, %v217_v6  ;;  %v197_v33 = vld [vmem:[%s1078_s28 + $0xc0] sm:$0xff]  ;;  %v190_v39 = vld [vmem:[%s1078_s28 + $0x88] sm:$0xff]  ;;  %v191_v43 = vld [vmem:[%s1078_s28 + $0x90] sm:$0xff] }
  0x24   : > { %787 = vmatpush.xpose.msk.msra.mxu3 %vm237_vm0, %v233_v7  ;;  %729 = vmatpush.xpose.msk.msra.mxu1 %vm237_vm0, %v233_v7  ;;  %v173_v34 = vld [vmem:[%s1078_s28] sm:$0xff]  ;;  %v184_v44 = vld [vmem:[%s1078_s28 + $0x58] sm:$0xff]  ;;  %v186_v52 = vld [vmem:[%s1078_s28 + $0x68] sm:$0xff] }
  0x25   : > { %v189_v35 = vld [vmem:[%s1078_s28 + $0x80] sm:$0xff]  ;;  %v200_v45 = vld [vmem:[%s1078_s28 + $0xd8] sm:$0xff]  ;;  %v202_v53 = vld [vmem:[%s1078_s28 + $0xe8] sm:$0xff] }
  0x26   : > { %v176_v46 = vld [vmem:[%s1078_s28 + $0x18] sm:$0xff]  ;;  %v185_v48 = vld [vmem:[%s1078_s28 + $0x60] sm:$0xff]  ;;  %v178_v54 = vld [vmem:[%s1078_s28 + $0x28] sm:$0xff] }
  0x27   : > { %772 = vmatpush.xpose.msk.msra.mxu2 %vm237_vm0, %v216_v8  ;;  %698 = vmatpush.xpose.msk.msra.mxu0 %vm237_vm0, %v216_v8  ;;  %v192_v47 = vld [vmem:[%s1078_s28 + $0x98] sm:$0xff]  ;;  %v201_v49 = vld [vmem:[%s1078_s28 + $0xe0] sm:$0xff]  ;;  %v194_v55 = vld [vmem:[%s1078_s28 + $0xa8] sm:$0xff] }
  0x28   : > { %788 = vmatpush.xpose.msk.msra.mxu3 %vm237_vm0, %v232_v9  ;;  %730 = vmatpush.xpose.msk.msra.mxu1 %vm237_vm0, %v232_v9  ;;  %v177_v50 = vld [vmem:[%s1078_s28 + $0x20] sm:$0xff]  ;;  %v187_v56 = vld [vmem:[%s1078_s28 + $0x70] sm:$0xff]  ;;  %v188_v60 = vld [vmem:[%s1078_s28 + $0x78] sm:$0xff] }
  0x29   : > { %v193_v51 = vld [vmem:[%s1078_s28 + $0xa0] sm:$0xff]  ;;  %v203_v57 = vld [vmem:[%s1078_s28 + $0xf0] sm:$0xff]  ;;  %v204_v61 = vld [vmem:[%s1078_s28 + $0xf8] sm:$0xff] }
  0x2a   : > { %v179_v58 = vld [vmem:[%s1078_s28 + $0x30] sm:$0xff]  ;;  %v180_v62 = vld [vmem:[%s1078_s28 + $0x38] sm:$0xff] }
  0x2b   : > { %773 = vmatpush.xpose.msk.msra.mxu2 %vm237_vm0, %v215_v10  ;;  %699 = vmatpush.xpose.msk.msra.mxu0 %vm237_vm0, %v215_v10  ;;  %v195_v59 = vld [vmem:[%s1078_s28 + $0xb0] sm:$0xff]  ;;  %v196_v63 = vld [vmem:[%s1078_s28 + $0xb8] sm:$0xff] }
  0x2c   : > { %789 = vmatpush.xpose.msk.msra.mxu3 %vm237_vm0, %v231_v11  ;;  %731 = vmatpush.xpose.msk.msra.mxu1 %vm237_vm0, %v231_v11 }
  0x2f   : > { %774 = vmatpush.xpose.msk.msra.mxu2 %vm237_vm0, %v214_v12  ;;  %700 = vmatpush.xpose.msk.msra.mxu0 %vm237_vm0, %v214_v12 }
  0x30   : > { %790 = vmatpush.xpose.msk.msra.mxu3 %vm237_vm0, %v230_v13  ;;  %732 = vmatpush.xpose.msk.msra.mxu1 %vm237_vm0, %v230_v13 }
  0x33   : > { %775 = vmatpush.xpose.msk.msra.mxu2 %vm237_vm0, %v213_v14  ;;  %701 = vmatpush.xpose.msk.msra.mxu0 %vm237_vm0, %v213_v14 }
  0x34   : > { %791 = vmatpush.xpose.msk.msra.mxu3 %vm237_vm0, %v229_v15  ;;  %733 = vmatpush.xpose.msk.msra.mxu1 %vm237_vm0, %v229_v15 }
  0x37   : > { %776 = vmatpush.xpose.msk.msra.mxu2 %vm237_vm0, %v212_v16  ;;  %702 = vmatpush.xpose.msk.msra.mxu0 %vm237_vm0, %v212_v16 }
  0x38   : > { %792 = vmatpush.xpose.msk.msra.mxu3 %vm237_vm0, %v228_v17  ;;  %734 = vmatpush.xpose.msk.msra.mxu1 %vm237_vm0, %v228_v17 }
  0x3b   : > { %777 = vmatpush.xpose.msk.msra.mxu2 %vm237_vm0, %v211_v18  ;;  %703 = vmatpush.xpose.msk.msra.mxu0 %vm237_vm0, %v211_v18 }
  0x3c   : > { %793 = vmatpush.xpose.msk.msra.mxu3 %vm237_vm0, %v227_v19  ;;  %735 = vmatpush.xpose.msk.msra.mxu1 %vm237_vm0, %v227_v19 }
  0x3f   : > { %778 = vmatpush.xpose.msk.msra.mxu2 %vm237_vm0, %v210_v20  ;;  %704 = vmatpush.xpose.msk.msra.mxu0 %vm237_vm0, %v210_v20 }
  0x40   : > { %794 = vmatpush.xpose.msk.msra.mxu3 %vm237_vm0, %v226_v21  ;;  %736 = vmatpush.xpose.msk.msra.mxu1 %vm237_vm0, %v226_v21 }
  0x43   : > { %779 = vmatpush.xpose.msk.msra.mxu2 %vm237_vm0, %v209_v22  ;;  %705 = vmatpush.xpose.msk.msra.mxu0 %vm237_vm0, %v209_v22 }
  0x44   : > { %795 = vmatpush.xpose.msk.msra.mxu3 %vm237_vm0, %v225_v23  ;;  %737 = vmatpush.xpose.msk.msra.mxu1 %vm237_vm0, %v225_v23 }
  0x47   : > { %780 = vmatpush.xpose.msk.msra.mxu2 %vm237_vm0, %v208_v24  ;;  %706 = vmatpush.xpose.msk.msra.mxu0 %vm237_vm0, %v208_v24 }
  0x48   : > { %796 = vmatpush.xpose.msk.msra.mxu3 %vm237_vm0, %v224_v25  ;;  %738 = vmatpush.xpose.msk.msra.mxu1 %vm237_vm0, %v224_v25 }
  0x4b   : > { %781 = vmatpush.xpose.msk.msra.mxu2 %vm237_vm0, %v207_v26  ;;  %707 = vmatpush.xpose.msk.msra.mxu0 %vm237_vm0, %v207_v26 }
  0x4c   : > { %797 = vmatpush.xpose.msk.msra.mxu3 %vm237_vm0, %v223_v27  ;;  %739 = vmatpush.xpose.msk.msra.mxu1 %vm237_vm0, %v223_v27 }
  0x4f   : > { %782 = vmatpush.xpose.msk.msra.mxu2 %vm237_vm0, %v206_v28  ;;  %708 = vmatpush.xpose.msk.msra.mxu0 %vm237_vm0, %v206_v28 }
  0x50   : > { %798 = vmatpush.xpose.msk.msra.mxu3 %vm237_vm0, %v222_v29  ;;  %740 = vmatpush.xpose.msk.msra.mxu1 %vm237_vm0, %v222_v29 }
  0x53   : > { %783 = vmatpush.xpose.msk.msra.mxu2 %vm237_vm0, %v205_v30  ;;  %709 = vmatpush.xpose.msk.msra.mxu0 %vm237_vm0, %v205_v30 }
  0x54   : > { %799 = vmatpush.xpose.msk.msra.mxu3 %vm237_vm0, %v221_v31  ;;  %741 = vmatpush.xpose.msk.msra.mxu1 %vm237_vm0, %v221_v31 }
  0x56   : > { %718 = vmatmul.msk.f32.vlgmr.msra.gmra.mxu2 %vm237_vm0, %v181_v32  ;;  %710 = vmatmul.msk.f32.vlgmr.msra.gmra.mxu0 %vm237_vm0, %v173_v34 }
  0x57   : > { %750 = vmatmul.msk.f32.vlgmr.msra.gmra.mxu3 %vm237_vm0, %v197_v33  ;;  %742 = vmatmul.msk.f32.vlgmr.msra.gmra.mxu1 %vm237_vm0, %v189_v35 }
  0x5e   : > { %719 = vmatmul.msk.f32.gmra.mxu2 %vm237_vm0, %v182_v36  ;;  %711 = vmatmul.msk.f32.gmra.mxu0 %vm237_vm0, %v174_v38 }
  0x5f   : > { %751 = vmatmul.msk.f32.gmra.mxu3 %vm237_vm0, %v198_v37  ;;  %743 = vmatmul.msk.f32.gmra.mxu1 %vm237_vm0, %v190_v39 }
  0x66   : > { %720 = vmatmul.msk.f32.gmra.mxu2 %vm237_vm0, %v183_v40  ;;  %712 = vmatmul.msk.f32.gmra.mxu0 %vm237_vm0, %v175_v42 }
  0x67   : > { %752 = vmatmul.msk.f32.gmra.mxu3 %vm237_vm0, %v199_v41  ;;  %744 = vmatmul.msk.f32.gmra.mxu1 %vm237_vm0, %v191_v43 }
  0x6e   : > { %721 = vmatmul.msk.f32.gmra.mxu2 %vm237_vm0, %v184_v44  ;;  %713 = vmatmul.msk.f32.gmra.mxu0 %vm237_vm0, %v176_v46 }
  0x6f   : > { %753 = vmatmul.msk.f32.gmra.mxu3 %vm237_vm0, %v200_v45  ;;  %745 = vmatmul.msk.f32.gmra.mxu1 %vm237_vm0, %v192_v47 }
  0x76   : > { %722 = vmatmul.msk.f32.gmra.mxu2 %vm237_vm0, %v185_v48  ;;  %714 = vmatmul.msk.f32.gmra.mxu0 %vm237_vm0, %v177_v50 }
  0x77   : > { %754 = vmatmul.msk.f32.gmra.mxu3 %vm237_vm0, %v201_v49  ;;  %746 = vmatmul.msk.f32.gmra.mxu1 %vm237_vm0, %v193_v51 }
  0x7e   : > { %723 = vmatmul.msk.f32.gmra.mxu2 %vm237_vm0, %v186_v52  ;;  %715 = vmatmul.msk.f32.gmra.mxu0 %vm237_vm0, %v178_v54 }
  0x7f   : > { %755 = vmatmul.msk.f32.gmra.mxu3 %vm237_vm0, %v202_v53  ;;  %747 = vmatmul.msk.f32.gmra.mxu1 %vm237_vm0, %v194_v55 }
  0x86   : > { %724 = vmatmul.msk.f32.gmra.mxu2 %vm237_vm0, %v187_v56  ;;  %716 = vmatmul.msk.f32.gmra.mxu0 %vm237_vm0, %v179_v58 }
  0x87   : > { %756 = vmatmul.msk.f32.gmra.mxu3 %vm237_vm0, %v203_v57  ;;  %748 = vmatmul.msk.f32.gmra.mxu1 %vm237_vm0, %v195_v59 }
  0x8e   : > { %725 = vmatmul.msk.f32.gmra.mxu2 %vm237_vm0, %v188_v60  ;;  %717 = vmatmul.msk.f32.gmra.mxu0 %vm237_vm0, %v180_v62 }
  0x8f   : > { %757 = vmatmul.msk.f32.gmra.mxu3 %vm237_vm0, %v204_v61  ;;  %749 = vmatmul.msk.f32.gmra.mxu1 %vm237_vm0, %v196_v63 }
  0xd3   : > { %v351_v0 = vpop.f32.mrf.mxu0 }
  0xd4   : > { %v512_v1 = vpop.f32.mrf.mxu1  ;;  %560 = vst [vmem:[%s1151_s3] sm:$0xff] %v351_v0 }
  0xd5   : > { %576 = vst [vmem:[%s1151_s3 + $0x80] sm:$0xff] %v512_v1 }
  0xd9   : > { %v375_v2 = vpop.f32.mrf.mxu2 }
  0xda   : > { %v536_v3 = vpop.f32.mrf.mxu3  ;;  %568 = vst [vmem:[%s1151_s3 + $0x40] sm:$0xff] %v375_v2 }
  0xdb   : > { %584 = vst [vmem:[%s1151_s3 + $0xc0] sm:$0xff] %v536_v3  ;;  %v354_v4 = vpop.f32.mrf.mxu0 }
  0xdc   : > { %v515_v5 = vpop.f32.mrf.mxu1  ;;  %561 = vst [vmem:[%s1151_s3 + $0x8] sm:$0xff] %v354_v4 }
  0xdd   : > { %577 = vst [vmem:[%s1151_s3 + $0x88] sm:$0xff] %v515_v5 }
  0xe1   : > { %v378_v6 = vpop.f32.mrf.mxu2 }
  0xe2   : > { %v539_v7 = vpop.f32.mrf.mxu3  ;;  %569 = vst [vmem:[%s1151_s3 + $0x48] sm:$0xff] %v378_v6 }
  0xe3   : > { %585 = vst [vmem:[%s1151_s3 + $0xc8] sm:$0xff] %v539_v7  ;;  %v357_v8 = vpop.f32.mrf.mxu0 }
  0xe4   : > { %v518_v9 = vpop.f32.mrf.mxu1  ;;  %562 = vst [vmem:[%s1151_s3 + $0x10] sm:$0xff] %v357_v8 }
  0xe5   : > { %578 = vst [vmem:[%s1151_s3 + $0x90] sm:$0xff] %v518_v9 }
  0xe9   : > { %v381_v10 = vpop.f32.mrf.mxu2 }
  0xea   : > { %v542_v11 = vpop.f32.mrf.mxu3  ;;  %570 = vst [vmem:[%s1151_s3 + $0x50] sm:$0xff] %v381_v10 }
  0xeb   : > { %586 = vst [vmem:[%s1151_s3 + $0xd0] sm:$0xff] %v542_v11  ;;  %v360_v12 = vpop.f32.mrf.mxu0 }
  0xec   : > { %v521_v13 = vpop.f32.mrf.mxu1  ;;  %563 = vst [vmem:[%s1151_s3 + $0x18] sm:$0xff] %v360_v12 }
  0xed   : > { %579 = vst [vmem:[%s1151_s3 + $0x98] sm:$0xff] %v521_v13 }
  0xf1   : > { %v384_v14 = vpop.f32.mrf.mxu2 }
  0xf2   : > { %v545_v15 = vpop.f32.mrf.mxu3  ;;  %571 = vst [vmem:[%s1151_s3 + $0x58] sm:$0xff] %v384_v14 }
  0xf3   : > { %587 = vst [vmem:[%s1151_s3 + $0xd8] sm:$0xff] %v545_v15  ;;  %v363_v16 = vpop.f32.mrf.mxu0 }
  0xf4   : > { %v524_v17 = vpop.f32.mrf.mxu1  ;;  %564 = vst [vmem:[%s1151_s3 + $0x20] sm:$0xff] %v363_v16 }
  0xf5   : > { %580 = vst [vmem:[%s1151_s3 + $0xa0] sm:$0xff] %v524_v17 }
  0xf9   : > { %v387_v18 = vpop.f32.mrf.mxu2 }
  0xfa   : > { %v548_v19 = vpop.f32.mrf.mxu3  ;;  %572 = vst [vmem:[%s1151_s3 + $0x60] sm:$0xff] %v387_v18 }
  0xfb   : > { %588 = vst [vmem:[%s1151_s3 + $0xe0] sm:$0xff] %v548_v19  ;;  %v366_v20 = vpop.f32.mrf.mxu0 }
  0xfc   : > { %v527_v21 = vpop.f32.mrf.mxu1  ;;  %565 = vst [vmem:[%s1151_s3 + $0x28] sm:$0xff] %v366_v20 }
  0xfd   : > { %581 = vst [vmem:[%s1151_s3 + $0xa8] sm:$0xff] %v527_v21 }
 0x101   : > { %v390_v22 = vpop.f32.mrf.mxu2 }
 0x102   : > { %v551_v23 = vpop.f32.mrf.mxu3  ;;  %573 = vst [vmem:[%s1151_s3 + $0x68] sm:$0xff] %v390_v22 }
 0x103   : > { %589 = vst [vmem:[%s1151_s3 + $0xe8] sm:$0xff] %v551_v23  ;;  %v369_v24 = vpop.f32.mrf.mxu0 }
 0x104   : > { %v530_v25 = vpop.f32.mrf.mxu1  ;;  %566 = vst [vmem:[%s1151_s3 + $0x30] sm:$0xff] %v369_v24 }
 0x105   : > { %582 = vst [vmem:[%s1151_s3 + $0xb0] sm:$0xff] %v530_v25 }
 0x109   : > { %v393_v26 = vpop.f32.mrf.mxu2 }
 0x10a   : > { %v554_v27 = vpop.f32.mrf.mxu3  ;;  %574 = vst [vmem:[%s1151_s3 + $0x70] sm:$0xff] %v393_v26 }
 0x10b   : > { %590 = vst [vmem:[%s1151_s3 + $0xf0] sm:$0xff] %v554_v27  ;;  %v372_v28 = vpop.f32.mrf.mxu0 }
 0x10c   : > { %v533_v29 = vpop.f32.mrf.mxu1  ;;  %567 = vst [vmem:[%s1151_s3 + $0x38] sm:$0xff] %v372_v28 }
 0x10d   : > { %583 = vst [vmem:[%s1151_s3 + $0xb8] sm:$0xff] %v533_v29 }
 0x111   : > { %v396_v30 = vpop.f32.mrf.mxu2 }
 0x112   : > { %v557_v31 = vpop.f32.mrf.mxu3  ;;  %575 = vst [vmem:[%s1151_s3 + $0x78] sm:$0xff] %v396_v30 }
 0x113   : > { %591 = vst [vmem:[%s1151_s3 + $0xf8] sm:$0xff] %v557_v31 }
 0x114   : > { %868 = shalt.err (!%p865_p3)
}
 0x115   : > { %s905_s26 = smov 128   ;;  %s906_s27 = smov 8  }
 0x116   : > { %800 = dma.vmem_to_hbm [thread:$0]  (%p960_p5), %s607_s8, 4096, %s609_s14, %s593_s13, %s905_s26, %s905_s26, %s906_s27  }
 0x117 PF: > { %p806_p4 = scmp.ge.s32.totalorder %s903_s12, 2  ;;  %s623_s28 = sand.u32 1, %s891_s9  }
 0x118   : > { %s624_s29 = scalar_lea.sflag [#allocation3], %s623_s28 }
 0x119   : > { %p803_p7 = pnand %p806_p4, %p964_p6 }
 0x11b   : > { %p804_p8 = pneg %p803_p7 }
 0x11d   : > { %886 = dma.done.wait (%p804_p8), %s624_s29, 4096  }
 0x11e   : > { %888 = vsyncadd (%p804_p8), %s624_s29, 4294963200  ;;  %p12_p9 = scmp.ge.s32.totalorder %s947_s15, 4   ;;  %s1224_s9 = smov %s895_s10 }
 0x11f   : > { %s1225_s10 = smov %s899_s11  ;;  %s1226_s11 = smov %s958_s18 }
 0x120   : > { %s1227_s12 = smov %s947_s15  ;;  %14 = sbr.rel (!%p12_p9) target bundleno = 3 (0x3), region = 66 }
 0x125   :  { %630 = vsyncpa [#allocation3], 1 }
 0x126   :  { %632 = vsyncpa [#allocation3 + $0x1], 1 }

</bundles_post_ra>
